<compile_context>
chip_gen: v5e
topology: v5e:2x2
jax: 0.10.0
libtpu: 0.0.40
codegen_flags: <defaults>
</compile_context>

<pallas_src>
import jax
import jax.numpy as jnp
from jax.experimental import pallas as pl
from jax.experimental.pallas import tpu as pltpu

TEXT_HIDDEN = 1024   # roberta-large hidden_size
IMG_HIDDEN = 768     # deit-base hidden_size
HID_DIM = 128        # self.hid_dim
EPS = 1e-6
SCALE = 100.0


def _round_up(x, m):
    return ((x + m - 1) // m) * m


def _btm_head_kernel(t_ref, bg_ref, wt_ref, bt_ref, wv_ref, bv_ref, out_ref):
    # Linear projections: f32 operands, f32 MXU accumulation, f32 bias add.
    t_h = jnp.dot(t_ref[...], wt_ref[...],
                  preferred_element_type=jnp.float32) + bt_ref[...]
    bg_h = jnp.dot(bg_ref[...], wv_ref[...],
                   preferred_element_type=jnp.float32) + bv_ref[...]

    # Cosine similarity along the hidden dim (torch.nn.CosineSimilarity, dim=1).
    # Fused exact rsqrt form: dot * rsqrt(max(|t|^2 * |b|^2, eps^2)); the eps
    # clamp never engages for realistic norms, matching PyTorch in practice.
    dot = jnp.sum(t_h * bg_h, axis=-1, keepdims=True)
    nt2 = jnp.sum(t_h * t_h, axis=-1, keepdims=True)
    nb2 = jnp.sum(bg_h * bg_h, axis=-1, keepdims=True)
    cos = dot * jax.lax.rsqrt(jnp.maximum(nt2 * nb2, EPS * EPS))

    # score = sigmoid(cos * 100); natural [block_b, 1] layout from the
    # keepdims reduction (output store path is not a bottleneck).
    out_ref[...] = jax.nn.sigmoid(cos * SCALE)


def btm_forward(text_represent, bg_represent, w_text, b_text, w_vis, b_vis,
                *, block_b_max=1024):
    """text_represent: [B, 1024], bg_represent: [B, 768] -> scores [B] f32.

    Weights are stored [in_dim, hid_dim] (transposed vs. nn.Linear [out, in]).
    """
    B = text_represent.shape[0]

    # Adaptive block size:
    #  * >= 2 blocks whenever B > 256 so both v7x TensorCores get work,
    #  * capped at block_b_max (VMEM / step-overhead sweet spot),
    #  * clamped to round_up(B, 8) so tiny batches don't oversize VMEM,
    #  * always a multiple of 8 (f32 sublane packing).
    bb = min(block_b_max, _round_up(pl.cdiv(B, 2), 256))
    bb = max(8, min(bb, _round_up(B, 8)))
    num_blocks = pl.cdiv(B, bb)
    b_pad = num_blocks * bb   # output rows (padded to whole blocks)

    t = text_represent.astype(jnp.float32)
    bg = bg_represent.astype(jnp.float32)
    wt = w_text.astype(jnp.float32)
    wv = w_vis.astype(jnp.float32)
    bt = b_text.reshape(1, HID_DIM).astype(jnp.float32)
    bv = b_vis.reshape(1, HID_DIM).astype(jnp.float32)

    bytes_accessed = (
        B * TEXT_HIDDEN * 4 + B * IMG_HIDDEN * 4   # f32 activations
        + wt.size * 4 + wv.size * 4                # f32 weights (fetched once)
        + bt.size * 4 + bv.size * 4                # f32 biases
        + b_pad * 4)                               # f32 scores
    cost = pl.CostEstimate(
        flops=2 * b_pad * (TEXT_HIDDEN + IMG_HIDDEN) * HID_DIM,
        transcendentals=3 * b_pad,                 # rsqrt + exp + recip per row
        bytes_accessed=bytes_accessed)

    out = pl.pallas_call(
        _btm_head_kernel,
        out_shape=jax.ShapeDtypeStruct((b_pad, 1), jnp.float32),
        grid=(num_blocks,),
        in_specs=[
            # Per-block activations (double-buffered across grid steps).
            # The last block may be ragged; out-of-range rows are garbage and
            # only affect output rows >= B, which are sliced off below.
            pl.BlockSpec((bb, TEXT_HIDDEN), lambda i: (i, 0)),
            pl.BlockSpec((bb, IMG_HIDDEN), lambda i: (i, 0)),
            # Weights / biases: constant index_map -> VMEM-resident across steps.
            pl.BlockSpec((TEXT_HIDDEN, HID_DIM), lambda i: (0, 0)),
            pl.BlockSpec((1, HID_DIM), lambda i: (0, 0)),
            pl.BlockSpec((IMG_HIDDEN, HID_DIM), lambda i: (0, 0)),
            pl.BlockSpec((1, HID_DIM), lambda i: (0, 0)),
        ],
        out_specs=pl.BlockSpec((bb, 1), lambda i: (i, 0)),
        compiler_params=pltpu.CompilerParams(
            dimension_semantics=("parallel",),
            vmem_limit_bytes=32 * 1024 * 1024),
        cost_estimate=cost,
    )(t, bg, wt, bt, wv, bv)

    return out.reshape(b_pad)[:B]   # (B,), matching PyTorch cos/sigmoid output


def _reference(text_represent, bg_represent, w_text, b_text, w_vis, b_vis):
    # Pure f32 reference mirroring the PyTorch head.
    t_h = jnp.dot(text_represent, w_text) + b_text
    bg_h = jnp.dot(bg_represent, w_vis) + b_vis
    num = jnp.sum(t_h * bg_h, axis=1)
    den = jnp.maximum(
        jnp.linalg.norm(t_h, axis=1) * jnp.linalg.norm(bg_h, axis=1), EPS)
    return jax.nn.sigmoid(num / den * SCALE)


if __name__ == "__main__":
    B = 2
    key = jax.random.PRNGKey(0)
    k_t, k_bg, k_wt, k_bt, k_wv, k_bv = jax.random.split(key, 6)

    # Synthetic backbone CLS outputs (stand-ins for RoBERTa / DeiT [:, 0, :]).
    text_represent = jax.random.normal(k_t, (B, TEXT_HIDDEN), jnp.float32)
    bg_represent = jax.random.normal(k_bg, (B, IMG_HIDDEN), jnp.float32)

    # Deterministic projection-head parameters (nn.Linear shapes, transposed).
    w_text = jax.random.normal(k_wt, (TEXT_HIDDEN, HID_DIM), jnp.float32) * 0.02
    b_text = jax.random.normal(k_bt, (HID_DIM,), jnp.float32) * 0.02
    w_vis = jax.random.normal(k_wv, (IMG_HIDDEN, HID_DIM), jnp.float32) * 0.02
    b_vis = jax.random.normal(k_bv, (HID_DIM,), jnp.float32) * 0.02

    score = btm_forward(text_represent, bg_represent, w_text, b_text,
                        w_vis, b_vis)
    score = jax.block_until_ready(score)

    ref = _reference(text_represent, bg_represent, w_text, b_text, w_vis, b_vis)
    assert score.shape == (B,)
    assert jnp.allclose(score, ref, atol=2e-3, rtol=2e-3), (score, ref)
    print("KERNEL_OK")
</pallas_src>

<mosaic_0001>
module attributes {stable_mosaic.version = 11 : i64} {
  func.func @_btm_head_kernel(%arg0: i32, %arg1: memref<8x1024xf32, #tpu.memory_space<vmem>>, %arg2: memref<8x768xf32, #tpu.memory_space<vmem>>, %arg3: memref<1024x128xf32, #tpu.memory_space<vmem>>, %arg4: memref<1x128xf32, #tpu.memory_space<vmem>>, %arg5: memref<768x128xf32, #tpu.memory_space<vmem>>, %arg6: memref<1x128xf32, #tpu.memory_space<vmem>>, %arg7: memref<8x1xf32, #tpu.memory_space<vmem>>) attributes {dimension_semantics = [#tpu.dimension_semantics<parallel>], iteration_bounds = array<i64: 1>, scalar_prefetch = 0 : i64, scratch_operands = 0 : i64, tpu.core_type = #tpu.core_type<tc>, window_params = [{transform_indices = @transform_0, window_bounds = array<i64: 8, 1024>}, {transform_indices = @transform_1, window_bounds = array<i64: 8, 768>}, {pipeline_mode = #tpu.pipeline_mode<synchronous>, transform_indices = @transform_2, window_bounds = array<i64: 1024, 128>}, {pipeline_mode = #tpu.pipeline_mode<synchronous>, transform_indices = @transform_3, window_bounds = array<i64: 1, 128>}, {pipeline_mode = #tpu.pipeline_mode<synchronous>, transform_indices = @transform_4, window_bounds = array<i64: 768, 128>}, {pipeline_mode = #tpu.pipeline_mode<synchronous>, transform_indices = @transform_5, window_bounds = array<i64: 1, 128>}, {transform_indices = @transform_6, window_bounds = array<i64: 8, 1>}]} {
    %c0 = arith.constant 0 : index
    %c0_0 = arith.constant 0 : index
    %0 = vector.load %arg1[%c0, %c0_0] : memref<8x1024xf32, #tpu.memory_space<vmem>>, vector<8x1024xf32>
    %c0_1 = arith.constant 0 : index
    %c0_2 = arith.constant 0 : index
    %1 = vector.load %arg3[%c0_1, %c0_2] : memref<1024x128xf32, #tpu.memory_space<vmem>>, vector<1024x128xf32>
    %cst = arith.constant dense<0.000000e+00> : vector<8x128xf32>
    %2 = tpu.matmul %0, %1, %cst {dimension_numbers = #tpu.dot_dimension_numbers<[1], [0], [0], [1], [0, 0, 1, 1], [], []>} : vector<8x1024xf32>, vector<1024x128xf32>, vector<8x128xf32> -> vector<8x128xf32>
    %c0_3 = arith.constant 0 : index
    %c0_4 = arith.constant 0 : index
    %3 = vector.load %arg4[%c0_3, %c0_4] : memref<1x128xf32, #tpu.memory_space<vmem>>, vector<1x128xf32>
    %4 = vector.broadcast %3 : vector<1x128xf32> to vector<8x128xf32>
    %5 = arith.addf %2, %4 : vector<8x128xf32>
    %c0_5 = arith.constant 0 : index
    %c0_6 = arith.constant 0 : index
    %6 = vector.load %arg2[%c0_5, %c0_6] : memref<8x768xf32, #tpu.memory_space<vmem>>, vector<8x768xf32>
    %c0_7 = arith.constant 0 : index
    %c0_8 = arith.constant 0 : index
    %7 = vector.load %arg5[%c0_7, %c0_8] : memref<768x128xf32, #tpu.memory_space<vmem>>, vector<768x128xf32>
    %cst_9 = arith.constant dense<0.000000e+00> : vector<8x128xf32>
    %8 = tpu.matmul %6, %7, %cst_9 {dimension_numbers = #tpu.dot_dimension_numbers<[1], [0], [0], [1], [0, 0, 1, 1], [], []>} : vector<8x768xf32>, vector<768x128xf32>, vector<8x128xf32> -> vector<8x128xf32>
    %c0_10 = arith.constant 0 : index
    %c0_11 = arith.constant 0 : index
    %9 = vector.load %arg6[%c0_10, %c0_11] : memref<1x128xf32, #tpu.memory_space<vmem>>, vector<1x128xf32>
    %10 = vector.broadcast %9 : vector<1x128xf32> to vector<8x128xf32>
    %11 = arith.addf %8, %10 : vector<8x128xf32>
    %12 = arith.mulf %5, %11 : vector<8x128xf32>
    %cst_12 = arith.constant dense<0.000000e+00> : vector<8xf32>
    %13 = vector.multi_reduction <add>, %12, %cst_12 [1] : vector<8x128xf32> to vector<8xf32>
    %14 = vector.shape_cast %13 : vector<8xf32> to vector<8x1xf32>
    %15 = arith.mulf %5, %5 : vector<8x128xf32>
    %cst_13 = arith.constant dense<0.000000e+00> : vector<8xf32>
    %16 = vector.multi_reduction <add>, %15, %cst_13 [1] : vector<8x128xf32> to vector<8xf32>
    %17 = vector.shape_cast %16 : vector<8xf32> to vector<8x1xf32>
    %18 = arith.mulf %11, %11 : vector<8x128xf32>
    %cst_14 = arith.constant dense<0.000000e+00> : vector<8xf32>
    %19 = vector.multi_reduction <add>, %18, %cst_14 [1] : vector<8x128xf32> to vector<8xf32>
    %20 = vector.shape_cast %19 : vector<8xf32> to vector<8x1xf32>
    %21 = arith.mulf %17, %20 : vector<8x1xf32>
    %cst_15 = arith.constant 9.99999996E-13 : f32
    %22 = vector.broadcast %cst_15 : f32 to vector<8x1xf32>
    %23 = arith.maximumf %21, %22 : vector<8x1xf32>
    %24 = math.rsqrt %23 : vector<8x1xf32>
    %25 = arith.mulf %14, %24 : vector<8x1xf32>
    %cst_16 = arith.constant 1.000000e+02 : f32
    %26 = vector.broadcast %cst_16 : f32 to vector<8x1xf32>
    %27 = arith.mulf %25, %26 : vector<8x1xf32>
    %28 = arith.negf %27 : vector<8x1xf32>
    %29 = math.exp %28 : vector<8x1xf32>
    %cst_17 = arith.constant 1.000000e+00 : f32
    %30 = vector.broadcast %cst_17 : f32 to vector<8x1xf32>
    %31 = arith.addf %30, %29 : vector<8x1xf32>
    %32 = arith.divf %30, %31 : vector<8x1xf32>
    %c0_18 = arith.constant 0 : index
    %c0_19 = arith.constant 0 : index
    %33 = vector.load %arg7[%c0_18, %c0_19] : memref<8x1xf32, #tpu.memory_space<vmem>>, vector<8x1xf32>
    tpu.vector_store %arg7[%c0_18, %c0_19], %32 {strides = array<i32>} : memref<8x1xf32, #tpu.memory_space<vmem>>, vector<8x1xf32>,
    return
  }
  func.func @transform_0(%arg0: i32) -> (i32, i32) {
    %c0_i32 = arith.constant 0 : i32
    %c0_i32_0 = arith.constant 0 : i32
    return %arg0, %c0_i32 : i32, i32
  }
  func.func @transform_1(%arg0: i32) -> (i32, i32) {
    %c0_i32 = arith.constant 0 : i32
    %c0_i32_0 = arith.constant 0 : i32
    return %arg0, %c0_i32 : i32, i32
  }
  func.func @transform_2(%arg0: i32) -> (i32, i32) {
    %c0_i32 = arith.constant 0 : i32
    %c0_i32_0 = arith.constant 0 : i32
    %c0_i32_1 = arith.constant 0 : i32
    return %c0_i32, %c0_i32_0 : i32, i32
  }
  func.func @transform_3(%arg0: i32) -> (i32, i32) {
    %c0_i32 = arith.constant 0 : i32
    %c0_i32_0 = arith.constant 0 : i32
    %c0_i32_1 = arith.constant 0 : i32
    return %c0_i32, %c0_i32_0 : i32, i32
  }
  func.func @transform_4(%arg0: i32) -> (i32, i32) {
    %c0_i32 = arith.constant 0 : i32
    %c0_i32_0 = arith.constant 0 : i32
    %c0_i32_1 = arith.constant 0 : i32
    return %c0_i32, %c0_i32_0 : i32, i32
  }
  func.func @transform_5(%arg0: i32) -> (i32, i32) {
    %c0_i32 = arith.constant 0 : i32
    %c0_i32_0 = arith.constant 0 : i32
    %c0_i32_1 = arith.constant 0 : i32
    return %c0_i32, %c0_i32_0 : i32, i32
  }
  func.func @transform_6(%arg0: i32) -> (i32, i32) {
    %c0_i32 = arith.constant 0 : i32
    %c0_i32_0 = arith.constant 0 : i32
    return %arg0, %c0_i32 : i32, i32
  }
}

</mosaic_0001>

<bundles_post_ra>
// kernel: tpu_custom_call.1
= control target key start
LH: loop header
LB: loop body
LE: loop exit
PB: predicated region body
PF: predicated region fallthrough
CT: control target
= control target key end

     0   :  { %11 = vsyncpa [#allocation3], 0  ;;  %s932_s0 = inlined_call_operand.hbm [shape: f32[2,1024], index: 0, kind: input, shape index: {}]   ;;  %s933_s1 = inlined_call_operand.hbm [shape: f32[2,768], index: 1, kind: input, shape index: {}]   ;;  %s934_s2 = inlined_call_operand.hbm [shape: f32[1024,128], index: 2, kind: input, shape index: {}]   ;;  %s935_s3 = inlined_call_operand.vmem [shape: f32[1,128], index: 3, kind: input, shape index: {}]   ;;  %s936_s4 = inlined_call_operand.hbm [shape: f32[768,128], index: 4, kind: input, shape index: {}]   ;;  %s937_s5 = inlined_call_operand.vmem [shape: f32[1,128], index: 5, kind: input, shape index: {}]   ;;  %s938_s6 = inlined_call_operand.vmem [shape: f32[8,1], index: 6, kind: output, shape index: {}]  }
   0x1   :  { %12 = vsyncpa [#allocation5], 0 }
   0x2   :  { %13 = vsyncpa [#allocation8], 0 }
   0x3   :  { %17 = vsyncadd [#allocation3], 768  ;;  %s18_s23 = sshll.u32 %s932_s0, 4  ;;  %s860_s24 = smov [#allocation2]   ;;  %s19_s23 = int_to_ptr.hbm [resolvable:$true] %s18_s23 }
   0x4   :  { %s20_s25 = sshll.u32 %s860_s24, 4  ;;  %s861_s26 = smov 256   ;;  %s21_s25 = int_to_ptr.vmem [resolvable:$true] %s20_s25 }
   0x5   :  { %s862_s27 = smov 16  }
   0x6   :  { %26 = dma.hbm_to_vmem [thread:$0]  %s19_s23, 256, %s21_s25, [#allocation3], %s861_s26, %s861_s26, %s862_s27  }
   0x7   :  { %30 = vsyncadd [#allocation5], 576  ;;  %s31_s30 = sshll.u32 %s933_s1, 4  ;;  %s863_s7 = smov [#allocation4]   ;;  %s32_s30 = int_to_ptr.hbm [resolvable:$true] %s31_s30 }
   0x8   :  { %s33_s8 = sshll.u32 %s863_s7, 4  ;;  %s44_s0 = sshll.u32 %s934_s2, 4  ;;  %s34_s8 = int_to_ptr.vmem [resolvable:$true] %s33_s8  ;;  %s45_s0 = int_to_ptr.hbm [resolvable:$true] %s44_s0 }
   0x9   :  { %s864_s11 = smov 192   ;;  %s865_s12 = smov 12  }
   0xa   :  { %39 = dma.hbm_to_vmem [thread:$0]  %s32_s30, 192, %s34_s8, [#allocation5], %s864_s11, %s864_s11, %s865_s12  }
   0xb   :  { %s866_s13 = smov [#allocation6]   ;;  %s867_s15 = smov 128  }
   0xc   :  { %s46_s14 = sshll.u32 %s866_s13, 4  ;;  %s868_s16 = smov 8   ;;  %s47_s14 = int_to_ptr.vmem [resolvable:$true] %s46_s14 }
   0xd   :  { %52 = dma.hbm_to_vmem [thread:$0]  %s45_s0, 16384, %s47_s14, [#allocation5], %s867_s15, %s867_s15, %s868_s16  }
   0xe   :  { %s59_s18 = sshll.u32 %s936_s4, 4  ;;  %s869_s19 = smov [#allocation7]   ;;  %s60_s18 = int_to_ptr.hbm [resolvable:$true] %s59_s18 }
   0xf   :  { %s61_s20 = sshll.u32 %s869_s19, 4  ;;  %s62_s20 = int_to_ptr.vmem [resolvable:$true] %s61_s20 }
  0x10   :  { %67 = dma.hbm_to_vmem [thread:$0]  %s60_s18, 12288, %s62_s20, [#allocation8], %s867_s15, %s867_s15, %s868_s16  }
  0x11   :  { %854 = dma.done.wait [#allocation3], 1024  }
  0x12   :  { %855 = vsyncadd [#allocation3], 4294966272 }
  0x13   :  { %856 = dma.done.wait [#allocation5], 17152  }
  0x14   :  { %857 = vsyncadd [#allocation5], 4294950144 }
  0x15   :  { %858 = dma.done.wait [#allocation8], 12288  }
  0x16   :  { %859 = vsyncadd [#allocation8], 4294955008  ;;  %v109_v0 = vld [vmem:[#allocation6 + $0x78] sm:$0xff]  ;;  %v108_v1 = vld [vmem:[#allocation6 + $0x70] sm:$0xff]  ;;  %vm730_vm5 = vcmask 7168  }
  0x17   :  { %v125_v2 = vld [vmem:[#allocation6 + $0xf8] sm:$0xff]  ;;  %265 = vmatpush.msra.mxu0 %v109_v0  ;;  %v124_v3 = vld [vmem:[#allocation6 + $0xf0] sm:$0xff]  ;;  %v107_v4 = vld [vmem:[#allocation6 + $0x68] sm:$0xff] }
  0x18   :  { %285 = vmatpush.msra.mxu1 %v125_v2  ;;  %v123_v5 = vld [vmem:[#allocation6 + $0xe8] sm:$0xff]  ;;  %v141_v6 = vld [vmem:[#allocation6 + $0x178] sm:$0xff]  ;;  %v140_v7 = vld [vmem:[#allocation6 + $0x170] sm:$0xff] }
  0x19   :  { %266 = vmatpush.msra.mxu0 %v108_v1  ;;  %v157_v8 = vld [vmem:[#allocation6 + $0x1f8] sm:$0xff]  ;;  %v106_v9 = vld [vmem:[#allocation6 + $0x60] sm:$0xff]  ;;  %305 = vmatpush.msra.mxu2 %v141_v6  ;;  %v139_v11 = vld [vmem:[#allocation6 + $0x168] sm:$0xff] }
  0x1a   :  { %286 = vmatpush.msra.mxu1 %v124_v3  ;;  %v122_v10 = vld [vmem:[#allocation6 + $0xe0] sm:$0xff]  ;;  %325 = vmatpush.msra.mxu3 %v157_v8  ;;  %v156_v12 = vld [vmem:[#allocation6 + $0x1f0] sm:$0xff]  ;;  %v105_v13 = vld [vmem:[#allocation6 + $0x58] sm:$0xff] }
  0x1b   :  { %267 = vmatpush.msra.mxu0 %v107_v4  ;;  %306 = vmatpush.msra.mxu2 %v140_v7  ;;  %v121_v14 = vld [vmem:[#allocation6 + $0xd8] sm:$0xff]  ;;  %v155_v15 = vld [vmem:[#allocation6 + $0x1e8] sm:$0xff]  ;;  %v138_v16 = vld [vmem:[#allocation6 + $0x160] sm:$0xff] }
  0x1c   :  { %287 = vmatpush.msra.mxu1 %v123_v5  ;;  %326 = vmatpush.msra.mxu3 %v156_v12  ;;  %v154_v17 = vld [vmem:[#allocation6 + $0x1e0] sm:$0xff]  ;;  %v104_v18 = vld [vmem:[#allocation6 + $0x50] sm:$0xff]  ;;  %v137_v20 = vld [vmem:[#allocation6 + $0x158] sm:$0xff] }
  0x1d   :  { %268 = vmatpush.msra.mxu0 %v106_v9  ;;  %307 = vmatpush.msra.mxu2 %v139_v11  ;;  %v120_v19 = vld [vmem:[#allocation6 + $0xd0] sm:$0xff]  ;;  %v153_v21 = vld [vmem:[#allocation6 + $0x1d8] sm:$0xff]  ;;  %v103_v22 = vld [vmem:[#allocation6 + $0x48] sm:$0xff] }
  0x1e   :  { %288 = vmatpush.msra.mxu1 %v122_v10  ;;  %327 = vmatpush.msra.mxu3 %v155_v15  ;;  %v119_v23 = vld [vmem:[#allocation6 + $0xc8] sm:$0xff]  ;;  %v136_v24 = vld [vmem:[#allocation6 + $0x150] sm:$0xff]  ;;  %v102_v26 = vld [vmem:[#allocation6 + $0x40] sm:$0xff] }
  0x1f   :  { %269 = vmatpush.msra.mxu0 %v105_v13  ;;  %308 = vmatpush.msra.mxu2 %v138_v16  ;;  %v152_v25 = vld [vmem:[#allocation6 + $0x1d0] sm:$0xff]  ;;  %v118_v27 = vld [vmem:[#allocation6 + $0xc0] sm:$0xff]  ;;  %v135_v28 = vld [vmem:[#allocation6 + $0x148] sm:$0xff] }
  0x20   :  { %289 = vmatpush.msra.mxu1 %v121_v14  ;;  %328 = vmatpush.msra.mxu3 %v154_v17  ;;  %v151_v29 = vld [vmem:[#allocation6 + $0x1c8] sm:$0xff]  ;;  %v101_v30 = vld [vmem:[#allocation6 + $0x38] sm:$0xff]  ;;  %v134_v32 = vld [vmem:[#allocation6 + $0x140] sm:$0xff] }
  0x21   :  { %270 = vmatpush.msra.mxu0 %v104_v18  ;;  %309 = vmatpush.msra.mxu2 %v137_v20  ;;  %v117_v31 = vld [vmem:[#allocation6 + $0xb8] sm:$0xff]  ;;  %v150_v33 = vld [vmem:[#allocation6 + $0x1c0] sm:$0xff]  ;;  %v100_v34 = vld [vmem:[#allocation6 + $0x30] sm:$0xff] }
  0x22   :  { %290 = vmatpush.msra.mxu1 %v120_v19  ;;  %329 = vmatpush.msra.mxu3 %v153_v21  ;;  %v116_v35 = vld [vmem:[#allocation6 + $0xb0] sm:$0xff]  ;;  %v133_v36 = vld [vmem:[#allocation6 + $0x138] sm:$0xff]  ;;  %v99_v38 = vld [vmem:[#allocation6 + $0x28] sm:$0xff] }
  0x23   :  { %271 = vmatpush.msra.mxu0 %v103_v22  ;;  %310 = vmatpush.msra.mxu2 %v136_v24  ;;  %v149_v37 = vld [vmem:[#allocation6 + $0x1b8] sm:$0xff]  ;;  %v115_v39 = vld [vmem:[#allocation6 + $0xa8] sm:$0xff]  ;;  %v132_v40 = vld [vmem:[#allocation6 + $0x130] sm:$0xff] }
  0x24   :  { %291 = vmatpush.msra.mxu1 %v119_v23  ;;  %330 = vmatpush.msra.mxu3 %v152_v25  ;;  %v148_v41 = vld [vmem:[#allocation6 + $0x1b0] sm:$0xff]  ;;  %v98_v42 = vld [vmem:[#allocation6 + $0x20] sm:$0xff]  ;;  %v131_v44 = vld [vmem:[#allocation6 + $0x128] sm:$0xff] }
  0x25   :  { %272 = vmatpush.msra.mxu0 %v102_v26  ;;  %311 = vmatpush.msra.mxu2 %v135_v28  ;;  %v114_v43 = vld [vmem:[#allocation6 + $0xa0] sm:$0xff]  ;;  %v147_v45 = vld [vmem:[#allocation6 + $0x1a8] sm:$0xff]  ;;  %v97_v46 = vld [vmem:[#allocation6 + $0x18] sm:$0xff] }
  0x26   :  { %292 = vmatpush.msra.mxu1 %v118_v27  ;;  %331 = vmatpush.msra.mxu3 %v151_v29  ;;  %v113_v47 = vld [vmem:[#allocation6 + $0x98] sm:$0xff]  ;;  %v130_v48 = vld [vmem:[#allocation6 + $0x120] sm:$0xff]  ;;  %v96_v50 = vld [vmem:[#allocation6 + $0x10] sm:$0xff] }
  0x27   :  { %273 = vmatpush.msra.mxu0 %v101_v30  ;;  %312 = vmatpush.msra.mxu2 %v134_v32  ;;  %v146_v49 = vld [vmem:[#allocation6 + $0x1a0] sm:$0xff]  ;;  %v112_v51 = vld [vmem:[#allocation6 + $0x90] sm:$0xff]  ;;  %v129_v52 = vld [vmem:[#allocation6 + $0x118] sm:$0xff] }
  0x28   :  { %293 = vmatpush.msra.mxu1 %v117_v31  ;;  %332 = vmatpush.msra.mxu3 %v150_v33  ;;  %v145_v53 = vld [vmem:[#allocation6 + $0x198] sm:$0xff]  ;;  %v95_v54 = vld [vmem:[#allocation6 + $0x8] sm:$0xff]  ;;  %v128_v56 = vld [vmem:[#allocation6 + $0x110] sm:$0xff] }
  0x29   :  { %274 = vmatpush.msra.mxu0 %v100_v34  ;;  %313 = vmatpush.msra.mxu2 %v133_v36  ;;  %v111_v55 = vld [vmem:[#allocation6 + $0x88] sm:$0xff]  ;;  %v144_v57 = vld [vmem:[#allocation6 + $0x190] sm:$0xff]  ;;  %v94_v58 = vld [vmem:[#allocation6] sm:$0xff] }
  0x2a   :  { %294 = vmatpush.msra.mxu1 %v116_v35  ;;  %333 = vmatpush.msra.mxu3 %v149_v37  ;;  %v110_v59 = vld [vmem:[#allocation6 + $0x80] sm:$0xff]  ;;  %v173_v60 = vld [vmem:[#allocation6 + $0x278] sm:$0xff]  ;;  %v127_v62 = vld [vmem:[#allocation6 + $0x108] sm:$0xff] }
  0x2b   :  { %275 = vmatpush.msra.mxu0 %v99_v38  ;;  %314 = vmatpush.msra.mxu2 %v132_v40  ;;  %v189_v61 = vld [vmem:[#allocation6 + $0x2f8] sm:$0xff]  ;;  %v143_v63 = vld [vmem:[#allocation6 + $0x188] sm:$0xff]  ;;  %v172_v0 = vld [vmem:[#allocation6 + $0x270] sm:$0xff] }
  0x2c   :  { %295 = vmatpush.msra.mxu1 %v115_v39  ;;  %334 = vmatpush.msra.mxu3 %v148_v41  ;;  %v188_v1 = vld [vmem:[#allocation6 + $0x2f0] sm:$0xff]  ;;  %v126_v2 = vld [vmem:[#allocation6 + $0x100] sm:$0xff]  ;;  %v171_v4 = vld [vmem:[#allocation6 + $0x268] sm:$0xff] }
  0x2d   :  { %276 = vmatpush.msra.mxu0 %v98_v42  ;;  %315 = vmatpush.msra.mxu2 %v131_v44  ;;  %v142_v3 = vld [vmem:[#allocation6 + $0x180] sm:$0xff]  ;;  %v187_v5 = vld [vmem:[#allocation6 + $0x2e8] sm:$0xff]  ;;  %v205_v6 = vld [vmem:[#allocation6 + $0x378] sm:$0xff] }
  0x2e   :  { %296 = vmatpush.msra.mxu1 %v114_v43  ;;  %335 = vmatpush.msra.mxu3 %v147_v45  ;;  %v221_v7 = vld [vmem:[#allocation6 + $0x3f8] sm:$0xff]  ;;  %v170_v8 = vld [vmem:[#allocation6 + $0x260] sm:$0xff]  ;;  %v204_v11 = vld [vmem:[#allocation6 + $0x370] sm:$0xff] }
  0x2f   :  { %277 = vmatpush.msra.mxu0 %v97_v46  ;;  %316 = vmatpush.msra.mxu2 %v130_v48  ;;  %v186_v9 = vld [vmem:[#allocation6 + $0x2e0] sm:$0xff]  ;;  %v169_v10 = vld [vmem:[#allocation6 + $0x258] sm:$0xff]  ;;  %v220_v12 = vld [vmem:[#allocation6 + $0x3f0] sm:$0xff] }
  0x30   :  { %297 = vmatpush.msra.mxu1 %v113_v47  ;;  %336 = vmatpush.msra.mxu3 %v146_v49  ;;  %v168_v13 = vld [vmem:[#allocation6 + $0x250] sm:$0xff]  ;;  %v185_v14 = vld [vmem:[#allocation6 + $0x2d8] sm:$0xff]  ;;  %v203_v15 = vld [vmem:[#allocation6 + $0x368] sm:$0xff] }
  0x31   :  { %278 = vmatpush.msra.mxu0 %v96_v50  ;;  %317 = vmatpush.msra.mxu2 %v129_v52  ;;  %v184_v16 = vld [vmem:[#allocation6 + $0x2d0] sm:$0xff]  ;;  %v219_v17 = vld [vmem:[#allocation6 + $0x3e8] sm:$0xff]  ;;  %v88_v19 = vld [vmem:[#allocation2 + $0x10] sm:$0xff] }
  0x32   :  { %298 = vmatpush.msra.mxu1 %v112_v51  ;;  %337 = vmatpush.msra.mxu3 %v145_v53  ;;  %v86_v18 = vld [vmem:[#allocation2] sm:$0xff]  ;;  %v92_v21 = vld [vmem:[#allocation2 + $0x30] sm:$0xff]  ;;  %236 = vst [vmem:[#allocation1 + $0x1] ss:$4 sm:$0xff] %v88_v19  ;;  %v167_v24 = vld [vmem:[#allocation6 + $0x248] sm:$0xff] }
  0x33   :  { %279 = vmatpush.msra.mxu0 %v95_v54  ;;  %318 = vmatpush.msra.mxu2 %v128_v56  ;;  %v90_v20 = vld [vmem:[#allocation2 + $0x20] sm:$0xff]  ;;  %234 = vst [vmem:[#allocation1] ss:$4 sm:$0xff] %v86_v18  ;;  %v202_v22 = vld [vmem:[#allocation6 + $0x360] sm:$0xff]  ;;  %v183_v25 = vld [vmem:[#allocation6 + $0x2c8] sm:$0xff] }
  0x34   :  { %299 = vmatpush.msra.mxu1 %v111_v55  ;;  %338 = vmatpush.msra.mxu3 %v144_v57  ;;  %v218_v23 = vld [vmem:[#allocation6 + $0x3e0] sm:$0xff]  ;;  %238 = vst [vmem:[#allocation1 + $0x2] ss:$4 sm:$0xff] %v90_v20  ;;  %v201_v26 = vld [vmem:[#allocation6 + $0x358] sm:$0xff]  ;;  %v200_v31 = vld [vmem:[#allocation6 + $0x350] sm:$0xff] }
  0x35   :  { %280 = vmatpush.msra.mxu0 %v94_v58  ;;  %319 = vmatpush.msra.mxu2 %v127_v62  ;;  %v217_v27 = vld [vmem:[#allocation6 + $0x3d8] sm:$0xff]  ;;  %240 = vst [vmem:[#allocation1 + $0x3] ss:$4 sm:$0xff] %v92_v21  ;;  %v166_v28 = vld [vmem:[#allocation6 + $0x240] sm:$0xff]  ;;  %v216_v32 = vld [vmem:[#allocation6 + $0x3d0] sm:$0xff] }
  0x36   :  { %300 = vmatpush.msra.mxu1 %v110_v59  ;;  %339 = vmatpush.msra.mxu3 %v143_v63  ;;  %v182_v29 = vld [vmem:[#allocation6 + $0x2c0] sm:$0xff]  ;;  %v165_v30 = vld [vmem:[#allocation6 + $0x238] sm:$0xff]  ;;  %v164_v33 = vld [vmem:[#allocation6 + $0x230] sm:$0xff] }
  0x37   :  { %345 = vmatpush.msrb.mxu0 %v173_v60  ;;  %320 = vmatpush.msra.mxu2 %v126_v2  ;;  %v181_v34 = vld [vmem:[#allocation6 + $0x2b8] sm:$0xff]  ;;  %v199_v35 = vld [vmem:[#allocation6 + $0x348] sm:$0xff]  ;;  %v180_v36 = vld [vmem:[#allocation6 + $0x2b0] sm:$0xff] }
  0x38   :  { %365 = vmatpush.msrb.mxu1 %v189_v61  ;;  %340 = vmatpush.msra.mxu3 %v142_v3  ;;  %v198_v37 = vld [vmem:[#allocation6 + $0x340] sm:$0xff]  ;;  %v215_v38 = vld [vmem:[#allocation6 + $0x3c8] sm:$0xff]  ;;  %v87_v39 = vld [vmem:[#allocation2 + $0x8] sm:$0xff] }
  0x39   :  { %346 = vmatpush.msrb.mxu0 %v172_v0  ;;  %385 = vmatpush.msrb.mxu2 %v205_v6  ;;  %v163_v40 = vld [vmem:[#allocation6 + $0x228] sm:$0xff]  ;;  %v214_v42 = vld [vmem:[#allocation6 + $0x3c0] sm:$0xff]  ;;  %242 = vst [vmem:[#allocation1 + $0x20] ss:$4 sm:$0xff] %v87_v39  ;;  %v197_v44 = vld [vmem:[#allocation6 + $0x338] sm:$0xff] }
  0x3a   :  { %366 = vmatpush.msrb.mxu1 %v188_v1  ;;  %405 = vmatpush.msrb.mxu3 %v221_v7  ;;  %v179_v41 = vld [vmem:[#allocation6 + $0x2a8] sm:$0xff]  ;;  %v213_v45 = vld [vmem:[#allocation6 + $0x3b8] sm:$0xff]  ;;  %v425_v46 = vld [vmem:[#allocation4] sm:$0xff] }
  0x3b   :  { %347 = vmatpush.msrb.mxu0 %v171_v4  ;;  %386 = vmatpush.msrb.mxu2 %v204_v11  ;;  %v89_v43 = vld [vmem:[#allocation2 + $0x18] sm:$0xff]  ;;  %v427_v47 = vld [vmem:[#allocation4 + $0xc] sm:$0xff]  ;;  %v431_v55 = vld [vmem:[#allocation4 + $0x24] sm:$0xff] }
  0x3c   :  { %367 = vmatpush.msrb.mxu1 %v187_v5  ;;  %406 = vmatpush.msrb.mxu3 %v220_v12  ;;  %v429_v48 = vld [vmem:[#allocation4 + $0x18] sm:$0xff]  ;;  %244 = vst [vmem:[#allocation1 + $0x21] ss:$4 sm:$0xff] %v89_v43  ;;  %v251_v49 = vld.sshfl [vmem:[#allocation1 + $0x10] sm:$0xff pattern:$0x73625140] }
  0x3d   :  { %348 = vmatpush.msrb.mxu0 %v170_v8  ;;  %387 = vmatpush.msrb.mxu2 %v203_v15  ;;  %v917_v50 = vld.sshfl [vmem:[#allocation1] sm:$0xff pattern:$0x73625140]  ;;  %v252_v51 = vld.sshfl [vmem:[#allocation1 + $0x18] sm:$0xff pattern:$0x73625140] }
  0x3e   :  { %368 = vmatpush.msrb.mxu1 %v186_v9  ;;  %407 = vmatpush.msrb.mxu3 %v219_v17  ;;  %v919_v52 = vld.sshfl [vmem:[#allocation1 + $0x8] sm:$0xff pattern:$0x73625140]  ;;  %v162_v53 = vld [vmem:[#allocation6 + $0x220] sm:$0xff]  ;;  %v91_v58 = vld [vmem:[#allocation2 + $0x28] sm:$0xff] }
  0x3f   :  { %349 = vmatpush.msrb.mxu0 %v169_v10  ;;  %388 = vmatpush.msrb.mxu2 %v202_v22  ;;  %v178_v54 = vld [vmem:[#allocation6 + $0x2a0] sm:$0xff]  ;;  %541 = vst [vmem:[#allocation1] ss:$4 sm:$0xff] %v425_v46  ;;  %v196_v56 = vld [vmem:[#allocation6 + $0x330] sm:$0xff]  ;;  %v161_v59 = vld [vmem:[#allocation6 + $0x218] sm:$0xff] }
  0x40   :  { %369 = vmatpush.msrb.mxu1 %v185_v14  ;;  %408 = vmatpush.msrb.mxu3 %v218_v23  ;;  %v212_v57 = vld [vmem:[#allocation6 + $0x3b0] sm:$0xff]  ;;  %543 = vst [vmem:[#allocation1 + $0x1] ss:$4 sm:$0xff] %v427_v47  ;;  %v177_v60 = vld [vmem:[#allocation6 + $0x298] sm:$0xff]  ;;  %v93_v61 = vld [vmem:[#allocation2 + $0x38] sm:$0xff] }
  0x41   :  { %350 = vmatpush.msrb.mxu0 %v168_v13  ;;  %389 = vmatpush.msrb.mxu2 %v201_v26  ;;  %545 = vst [vmem:[#allocation1 + $0x2] ss:$4 sm:$0xff] %v429_v48  ;;  %v195_v62 = vld [vmem:[#allocation6 + $0x328] sm:$0xff]  ;;  %v160_v0 = vld [vmem:[#allocation6 + $0x210] sm:$0xff]  ;;  %v194_v2 = vld [vmem:[#allocation6 + $0x320] sm:$0xff] }
  0x42   :  { %370 = vmatpush.msrb.mxu1 %v184_v16  ;;  %409 = vmatpush.msrb.mxu3 %v217_v27  ;;  %v211_v63 = vld [vmem:[#allocation6 + $0x3a8] sm:$0xff]  ;;  %547 = vst [vmem:[#allocation1 + $0x3] ss:$4 sm:$0xff] %v431_v55  ;;  %v176_v1 = vld [vmem:[#allocation6 + $0x290] sm:$0xff]  ;;  %v210_v3 = vld [vmem:[#allocation6 + $0x3a0] sm:$0xff] }
  0x43   :  { %351 = vmatpush.msrb.mxu0 %v167_v24  ;;  %390 = vmatpush.msrb.mxu2 %v200_v31  ;;  %246 = vst [vmem:[#allocation1 + $0x22] ss:$4 sm:$0xff] %v91_v58  ;;  %v159_v4 = vld [vmem:[#allocation6 + $0x208] sm:$0xff]  ;;  %v193_v6 = vld [vmem:[#allocation6 + $0x318] sm:$0xff]  ;;  %v158_v7 = vld [vmem:[#allocation6 + $0x200] sm:$0xff] }
  0x44   :  { %371 = vmatpush.msrb.mxu1 %v183_v25  ;;  %410 = vmatpush.msrb.mxu3 %v216_v32  ;;  %248 = vst [vmem:[#allocation1 + $0x23] ss:$4 sm:$0xff] %v93_v61  ;;  %v175_v5 = vld [vmem:[#allocation6 + $0x288] sm:$0xff]  ;;  %v448_v8 = vld [vmem:[#allocation7 + $0x78] sm:$0xff]  ;;  %v174_v9 = vld [vmem:[#allocation6 + $0x280] sm:$0xff] }
  0x45   :  { %352 = vmatpush.msrb.mxu0 %v166_v28  ;;  %391 = vmatpush.msrb.mxu2 %v199_v35  ;;  %v192_v10 = vld [vmem:[#allocation6 + $0x310] sm:$0xff]  ;;  %v209_v11 = vld [vmem:[#allocation6 + $0x398] sm:$0xff]  ;;  %v191_v14 = vld [vmem:[#allocation6 + $0x308] sm:$0xff] }
  0x46   :  { %372 = vmatpush.msrb.mxu1 %v182_v29  ;;  %411 = vmatpush.msrb.mxu3 %v215_v38  ;;  %v447_v12 = vld [vmem:[#allocation7 + $0x70] sm:$0xff]  ;;  %v464_v13 = vld [vmem:[#allocation7 + $0xf8] sm:$0xff]  ;;  %v428_v17 = vld [vmem:[#allocation4 + $0x14] sm:$0xf] }
  0x47   :  { %353 = vmatpush.msrb.mxu0 %v165_v30  ;;  %392 = vmatpush.msrb.mxu2 %v198_v37  ;;  %v208_v15 = vld [vmem:[#allocation6 + $0x390] sm:$0xff]  ;;  %v426_v16 = vld [vmem:[#allocation4 + $0x8] sm:$0xf]  ;;  %v446_v23 = vld [vmem:[#allocation7 + $0x68] sm:$0xff] }
  0x48   :  { %373 = vmatpush.msrb.mxu1 %v181_v34  ;;  %412 = vmatpush.msrb.mxu3 %v214_v42  ;;  %v430_v18 = vld [vmem:[#allocation4 + $0x20] sm:$0xf]  ;;  %v432_v25 = vld [vmem:[#allocation4 + $0x2c] sm:$0xf]  ;;  %v190_v26 = vld [vmem:[#allocation6 + $0x300] sm:$0xff] }
  0x49   :  { %354 = vmatpush.msrb.mxu0 %v164_v33  ;;  %393 = vmatpush.msrb.mxu2 %v197_v44  ;;  %v463_v24 = vld [vmem:[#allocation7 + $0xf0] sm:$0xff]  ;;  %v207_v27 = vld [vmem:[#allocation6 + $0x388] sm:$0xff]  ;;  %v445_v28 = vld [vmem:[#allocation7 + $0x60] sm:$0xff] }
  0x4a   :  { %374 = vmatpush.msrb.mxu1 %v180_v36  ;;  %413 = vmatpush.msrb.mxu3 %v213_v45  ;;  %v462_v29 = vld [vmem:[#allocation7 + $0xe8] sm:$0xff]  ;;  %v206_v30 = vld [vmem:[#allocation6 + $0x380] sm:$0xff]  ;;  %v444_v31 = vld [vmem:[#allocation7 + $0x58] sm:$0xff] }
  0x4b   :  { %355 = vmatpush.msrb.mxu0 %v163_v40  ;;  %394 = vmatpush.msrb.mxu2 %v196_v56  ;;  %v255_v19 = vld.sshfl [vmem:[#allocation1 + $0x30] sm:$0xff pattern:$0x73625140]  ;;  %v253_v20 = vld.sshfl [vmem:[#allocation1 + $0x20] sm:$0xff pattern:$0x73625140] }
  0x4c   :  { %375 = vmatpush.msrb.mxu1 %v179_v41  ;;  %414 = vmatpush.msrb.mxu3 %v212_v57  ;;  %v256_v21 = vld.sshfl [vmem:[#allocation1 + $0x38] sm:$0xff pattern:$0x73625140]  ;;  %v254_v22 = vld.sshfl [vmem:[#allocation1 + $0x28] sm:$0xff pattern:$0x73625140] }
  0x4d   :  { %356 = vmatpush.msrb.mxu0 %v162_v53  ;;  %395 = vmatpush.msrb.mxu2 %v195_v62  ;;  %549 = vst [vmem:[#allocation1 + $0x20] ss:$4 sm:$0xff] %v426_v16  ;;  %v461_v32 = vld [vmem:[#allocation7 + $0xe0] sm:$0xff]  ;;  %v480_v33 = vld [vmem:[#allocation7 + $0x178] sm:$0xff]  ;;  %v443_v34 = vld [vmem:[#allocation7 + $0x50] sm:$0xff] }
  0x4e   :  { %376 = vmatpush.msrb.mxu1 %v178_v54  ;;  %415 = vmatpush.msrb.mxu3 %v211_v63  ;;  %551 = vst [vmem:[#allocation1 + $0x21] ss:$4 sm:$0xff] %v428_v17  ;;  %v460_v35 = vld [vmem:[#allocation7 + $0xd8] sm:$0xff]  ;;  %v479_v36 = vld [vmem:[#allocation7 + $0x170] sm:$0xff]  ;;  %v442_v38 = vld [vmem:[#allocation7 + $0x48] sm:$0xff] }
  0x4f   :  { %357 = vmatpush.msrb.mxu0 %v161_v59  ;;  %396 = vmatpush.msrb.mxu2 %v194_v2  ;;  %553 = vst [vmem:[#allocation1 + $0x22] ss:$4 sm:$0xff] %v430_v18  ;;  %v496_v37 = vld [vmem:[#allocation7 + $0x1f8] sm:$0xff]  ;;  %v459_v39 = vld [vmem:[#allocation7 + $0xd0] sm:$0xff]  ;;  %v478_v40 = vld [vmem:[#allocation7 + $0x168] sm:$0xff] }
  0x50   :  { %377 = vmatpush.msrb.mxu1 %v177_v60  ;;  %416 = vmatpush.msrb.mxu3 %v210_v3  ;;  %555 = vst [vmem:[#allocation1 + $0x23] ss:$4 sm:$0xff] %v432_v25  ;;  %v495_v41 = vld [vmem:[#allocation7 + $0x1f0] sm:$0xff]  ;;  %v441_v42 = vld [vmem:[#allocation7 + $0x40] sm:$0xff]  ;;  %v458_v43 = vld [vmem:[#allocation7 + $0xc8] sm:$0xff] }
  0x51   :  { %358 = vmatpush.msrb.mxu0 %v160_v0  ;;  %321 = vmatmul.f32.vlgmr.msra.gmra.mxu2 %v251_v49  ;;  %v477_v44 = vld [vmem:[#allocation7 + $0x160] sm:$0xff]  ;;  %v494_v45 = vld [vmem:[#allocation7 + $0x1e8] sm:$0xff]  ;;  %v440_v46 = vld [vmem:[#allocation7 + $0x38] sm:$0xff] }
  0x52   :  { %378 = vmatpush.msrb.mxu1 %v176_v1  ;;  %397 = vmatpush.msrb.mxu2 %v193_v6  ;;  %v457_v47 = vld [vmem:[#allocation7 + $0xc0] sm:$0xff]  ;;  %v476_v48 = vld [vmem:[#allocation7 + $0x158] sm:$0xff]  ;;  %v438_v54 = vld [vmem:[#allocation7 + $0x28] sm:$0xff] }
  0x53   :  { %359 = vmatpush.msrb.mxu0 %v159_v4  ;;  %341 = vmatmul.f32.vlgmr.msra.gmra.mxu3 %v252_v51  ;;  %v493_v49 = vld [vmem:[#allocation7 + $0x1e0] sm:$0xff]  ;;  %v456_v51 = vld [vmem:[#allocation7 + $0xb8] sm:$0xff]  ;;  %v455_v55 = vld [vmem:[#allocation7 + $0xb0] sm:$0xff] }
  0x54   :  { %379 = vmatpush.msrb.mxu1 %v175_v5  ;;  %281 = vmatmul.f32.vlgmr.msra.gmra.mxu0 %v917_v50  ;;  %v439_v50 = vld [vmem:[#allocation7 + $0x30] sm:$0xff]  ;;  %v492_v53 = vld [vmem:[#allocation7 + $0x1d8] sm:$0xff]  ;;  %v474_v56 = vld [vmem:[#allocation7 + $0x148] sm:$0xff] }
  0x55   :  { %360 = vmatpush.msrb.mxu0 %v158_v7  ;;  %398 = vmatpush.msrb.mxu2 %v192_v10  ;;  %v491_v57 = vld [vmem:[#allocation7 + $0x1d0] sm:$0xff]  ;;  %v437_v58 = vld [vmem:[#allocation7 + $0x20] sm:$0xff]  ;;  %v454_v59 = vld [vmem:[#allocation7 + $0xa8] sm:$0xff] }
  0x56   :  { %380 = vmatpush.msrb.mxu1 %v174_v9  ;;  %417 = vmatpush.msrb.mxu3 %v209_v11  ;;  %v473_v60 = vld [vmem:[#allocation7 + $0x140] sm:$0xff]  ;;  %v490_v61 = vld [vmem:[#allocation7 + $0x1c8] sm:$0xff]  ;;  %v436_v62 = vld [vmem:[#allocation7 + $0x18] sm:$0xff] }
  0x57   :  { %568 = vmatpush.msra.mxu0 %v448_v8  ;;  %301 = vmatmul.f32.vlgmr.msra.gmra.mxu1 %v919_v52  ;;  %v475_v52 = vld [vmem:[#allocation7 + $0x150] sm:$0xff]  ;;  %v453_v63 = vld [vmem:[#allocation7 + $0xa0] sm:$0xff]  ;;  %v472_v0 = vld [vmem:[#allocation7 + $0x138] sm:$0xff] }
  0x58   :  { %588 = vmatpush.msra.mxu1 %v464_v13  ;;  %399 = vmatpush.msrb.mxu2 %v191_v14  ;;  %v489_v1 = vld [vmem:[#allocation7 + $0x1c0] sm:$0xff]  ;;  %v435_v2 = vld [vmem:[#allocation7 + $0x10] sm:$0xff]  ;;  %v452_v3 = vld [vmem:[#allocation7 + $0x98] sm:$0xff] }
  0x59   :  { %569 = vmatpush.msra.mxu0 %v447_v12  ;;  %418 = vmatpush.msrb.mxu3 %v208_v15  ;;  %v471_v4 = vld [vmem:[#allocation7 + $0x130] sm:$0xff]  ;;  %v488_v5 = vld [vmem:[#allocation7 + $0x1b8] sm:$0xff]  ;;  %v434_v6 = vld [vmem:[#allocation7 + $0x8] sm:$0xff] }
  0x5a   :  { %589 = vmatpush.msra.mxu1 %v463_v24  ;;  %400 = vmatpush.msrb.mxu2 %v190_v26  ;;  %v451_v7 = vld [vmem:[#allocation7 + $0x90] sm:$0xff]  ;;  %v470_v8 = vld [vmem:[#allocation7 + $0x128] sm:$0xff]  ;;  %v433_v10 = vld [vmem:[#allocation7] sm:$0xff] }
  0x5b   :  { %570 = vmatpush.msra.mxu0 %v446_v23  ;;  %419 = vmatpush.msrb.mxu3 %v207_v27  ;;  %v487_v9 = vld [vmem:[#allocation7 + $0x1b0] sm:$0xff]  ;;  %v450_v11 = vld [vmem:[#allocation7 + $0x88] sm:$0xff]  ;;  %v512_v12 = vld [vmem:[#allocation7 + $0x278] sm:$0xff] }
  0x5c   :  { %401 = vmatmul.f32.vlgmr.msrb.gmra.mxu2 %v255_v19  ;;  %590 = vmatpush.msra.mxu1 %v462_v29  ;;  %v469_v13 = vld [vmem:[#allocation7 + $0x120] sm:$0xff]  ;;  %v486_v15 = vld [vmem:[#allocation7 + $0x1a8] sm:$0xff]  ;;  %v511_v16 = vld [vmem:[#allocation7 + $0x270] sm:$0xff] }
  0x5d   :  { %571 = vmatpush.msra.mxu0 %v445_v28  ;;  %420 = vmatpush.msrb.mxu3 %v206_v30  ;;  %v449_v14 = vld [vmem:[#allocation7 + $0x80] sm:$0xff]  ;;  %v528_v17 = vld [vmem:[#allocation7 + $0x2f8] sm:$0xff]  ;;  %v526_v25 = vld [vmem:[#allocation7 + $0x2e8] sm:$0xff] }
  0x5e   :  { %361 = vmatmul.f32.vlgmr.msrb.gmra.mxu0 %v253_v20  ;;  %421 = vmatmul.f32.vlgmr.msrb.gmra.mxu3 %v256_v21  ;;  %v468_v18 = vld [vmem:[#allocation7 + $0x118] sm:$0xff]  ;;  %v485_v19 = vld [vmem:[#allocation7 + $0x1a0] sm:$0xff]  ;;  %v510_v20 = vld [vmem:[#allocation7 + $0x268] sm:$0xff] }
  0x5f   :  { %572 = vmatpush.msra.mxu0 %v444_v31  ;;  %591 = vmatpush.msra.mxu1 %v461_v32  ;;  %v527_v21 = vld [vmem:[#allocation7 + $0x2f0] sm:$0xff]  ;;  %v484_v23 = vld [vmem:[#allocation7 + $0x198] sm:$0xff]  ;;  %v509_v24 = vld [vmem:[#allocation7 + $0x260] sm:$0xff] }
  0x60   :  { %381 = vmatmul.f32.vlgmr.msrb.gmra.mxu1 %v254_v22  ;;  %608 = vmatpush.msra.mxu2 %v480_v33  ;;  %v467_v22 = vld [vmem:[#allocation7 + $0x110] sm:$0xff]  ;;  %v466_v26 = vld [vmem:[#allocation7 + $0x108] sm:$0xff]  ;;  %v508_v28 = vld [vmem:[#allocation7 + $0x258] sm:$0xff] }
  0x61   :  { %573 = vmatpush.msra.mxu0 %v443_v34  ;;  %592 = vmatpush.msra.mxu1 %v460_v35  ;;  %v483_v27 = vld [vmem:[#allocation7 + $0x190] sm:$0xff]  ;;  %v525_v29 = vld [vmem:[#allocation7 + $0x2e0] sm:$0xff]  ;;  %v482_v31 = vld [vmem:[#allocation7 + $0x188] sm:$0xff] }
  0x62   :  { %609 = vmatpush.msra.mxu2 %v479_v36  ;;  %628 = vmatpush.msra.mxu3 %v496_v37  ;;  %v465_v30 = vld [vmem:[#allocation7 + $0x100] sm:$0xff]  ;;  %v507_v32 = vld [vmem:[#allocation7 + $0x250] sm:$0xff]  ;;  %v524_v33 = vld [vmem:[#allocation7 + $0x2d8] sm:$0xff] }
  0x63   :  { %574 = vmatpush.msra.mxu0 %v442_v38  ;;  %593 = vmatpush.msra.mxu1 %v459_v39  ;;  %v558_v34 = vld.sshfl [vmem:[#allocation1 + $0x10] sm:$0xff pattern:$0x73625140]  ;;  %v481_v35 = vld [vmem:[#allocation7 + $0x180] sm:$0xff]  ;;  %v506_v36 = vld [vmem:[#allocation7 + $0x248] sm:$0xff] }
  0x64   :  { %610 = vmatpush.msra.mxu2 %v478_v40  ;;  %629 = vmatpush.msra.mxu3 %v495_v41  ;;  %v523_v37 = vld [vmem:[#allocation7 + $0x2d0] sm:$0xff]  ;;  %v556_v38 = vld.sshfl [vmem:[#allocation1] sm:$0xff pattern:$0x73625140]  ;;  %v505_v40 = vld [vmem:[#allocation7 + $0x240] sm:$0xff] }
  0x65   :  { %575 = vmatpush.msra.mxu0 %v441_v42  ;;  %594 = vmatpush.msra.mxu1 %v458_v43  ;;  %v559_v39 = vld.sshfl [vmem:[#allocation1 + $0x18] sm:$0xff pattern:$0x73625140]  ;;  %v522_v41 = vld [vmem:[#allocation7 + $0x2c8] sm:$0xff]  ;;  %v504_v43 = vld [vmem:[#allocation7 + $0x238] sm:$0xff] }
  0x66   :  { %611 = vmatpush.msra.mxu2 %v477_v44  ;;  %630 = vmatpush.msra.mxu3 %v494_v45  ;;  %v557_v42 = vld.sshfl [vmem:[#allocation1 + $0x8] sm:$0xff pattern:$0x73625140]  ;;  %v521_v44 = vld [vmem:[#allocation7 + $0x2c0] sm:$0xff] }
  0x67   :  { %576 = vmatpush.msra.mxu0 %v440_v46  ;;  %595 = vmatpush.msra.mxu1 %v457_v47  ;;  %v503_v45 = vld [vmem:[#allocation7 + $0x230] sm:$0xff]  ;;  %v520_v46 = vld [vmem:[#allocation7 + $0x2b8] sm:$0xff]  ;;  %v502_v47 = vld [vmem:[#allocation7 + $0x228] sm:$0xff] }
  0x68   :  { %612 = vmatpush.msra.mxu2 %v476_v48  ;;  %631 = vmatpush.msra.mxu3 %v493_v49  ;;  %v519_v48 = vld [vmem:[#allocation7 + $0x2b0] sm:$0xff]  ;;  %v501_v49 = vld [vmem:[#allocation7 + $0x220] sm:$0xff] }
  0x69   :  { %577 = vmatpush.msra.mxu0 %v439_v50  ;;  %596 = vmatpush.msra.mxu1 %v456_v51  ;;  %v518_v50 = vld [vmem:[#allocation7 + $0x2a8] sm:$0xff]  ;;  %v500_v51 = vld [vmem:[#allocation7 + $0x218] sm:$0xff] }
  0x6a   :  { %613 = vmatpush.msra.mxu2 %v475_v52  ;;  %632 = vmatpush.msra.mxu3 %v492_v53  ;;  %v517_v52 = vld [vmem:[#allocation7 + $0x2a0] sm:$0xff]  ;;  %v499_v53 = vld [vmem:[#allocation7 + $0x210] sm:$0xff] }
  0x6b   :  { %578 = vmatpush.msra.mxu0 %v438_v54  ;;  %597 = vmatpush.msra.mxu1 %v455_v55  ;;  %v516_v54 = vld [vmem:[#allocation7 + $0x298] sm:$0xff]  ;;  %v498_v55 = vld [vmem:[#allocation7 + $0x208] sm:$0xff] }
  0x6c   :  { %614 = vmatpush.msra.mxu2 %v474_v56  ;;  %633 = vmatpush.msra.mxu3 %v491_v57  ;;  %v515_v56 = vld [vmem:[#allocation7 + $0x290] sm:$0xff]  ;;  %v497_v57 = vld [vmem:[#allocation7 + $0x200] sm:$0xff] }
  0x6d   :  { %579 = vmatpush.msra.mxu0 %v437_v58  ;;  %598 = vmatpush.msra.mxu1 %v454_v59  ;;  %v514_v58 = vld [vmem:[#allocation7 + $0x288] sm:$0xff] }
  0x6e   :  { %615 = vmatpush.msra.mxu2 %v473_v60  ;;  %634 = vmatpush.msra.mxu3 %v490_v61  ;;  %v560_v59 = vld.sshfl [vmem:[#allocation1 + $0x20] sm:$0xff pattern:$0x73625140]  ;;  %v513_v60 = vld [vmem:[#allocation7 + $0x280] sm:$0xff] }
  0x6f   :  { %580 = vmatpush.msra.mxu0 %v436_v62  ;;  %599 = vmatpush.msra.mxu1 %v453_v63  ;;  %v561_v61 = vld.sshfl [vmem:[#allocation1 + $0x28] sm:$0xff pattern:$0x73625140]  ;;  %v750_v62 = vld [vmem:[%s935_s3] ss:$0 sm:$0xff] }
  0x70   :  { %616 = vmatpush.msra.mxu2 %v472_v0  ;;  %635 = vmatpush.msra.mxu3 %v489_v1 }
  0x71   :  { %581 = vmatpush.msra.mxu0 %v435_v2  ;;  %600 = vmatpush.msra.mxu1 %v452_v3 }
  0x72   :  { %617 = vmatpush.msra.mxu2 %v471_v4  ;;  %636 = vmatpush.msra.mxu3 %v488_v5 }
  0x73   :  { %582 = vmatpush.msra.mxu0 %v434_v6  ;;  %601 = vmatpush.msra.mxu1 %v451_v7 }
  0x74   :  { %618 = vmatpush.msra.mxu2 %v470_v8  ;;  %637 = vmatpush.msra.mxu3 %v487_v9 }
  0x75   :  { %583 = vmatpush.msra.mxu0 %v433_v10  ;;  %602 = vmatpush.msra.mxu1 %v450_v11 }
  0x76   :  { %619 = vmatpush.msra.mxu2 %v469_v13  ;;  %638 = vmatpush.msra.mxu3 %v486_v15 }
  0x77   :  { %648 = vmatpush.msrb.mxu0 %v512_v12  ;;  %603 = vmatpush.msra.mxu1 %v449_v14 }
  0x78   :  { %620 = vmatpush.msra.mxu2 %v468_v18  ;;  %639 = vmatpush.msra.mxu3 %v485_v19 }
  0x79   :  { %649 = vmatpush.msrb.mxu0 %v511_v16  ;;  %668 = vmatpush.msrb.mxu1 %v528_v17  ;;  %v751_v16 = vld [vmem:[%s937_s5] ss:$0 sm:$0xff] }
  0x7a   :  { %621 = vmatpush.msra.mxu2 %v467_v22  ;;  %640 = vmatpush.msra.mxu3 %v484_v23 }
  0x7b   :  { %650 = vmatpush.msrb.mxu0 %v510_v20  ;;  %669 = vmatpush.msrb.mxu1 %v527_v21 }
  0x7c   :  { %622 = vmatpush.msra.mxu2 %v466_v26  ;;  %641 = vmatpush.msra.mxu3 %v483_v27 }
  0x7d   :  { %651 = vmatpush.msrb.mxu0 %v509_v24  ;;  %670 = vmatpush.msrb.mxu1 %v526_v25 }
  0x7e   :  { %623 = vmatpush.msra.mxu2 %v465_v30  ;;  %642 = vmatpush.msra.mxu3 %v482_v31 }
  0x7f   :  { %652 = vmatpush.msrb.mxu0 %v508_v28  ;;  %671 = vmatpush.msrb.mxu1 %v525_v29 }
  0x80   :  { %624 = vmatmul.f32.vlgmr.msra.gmra.mxu2 %v558_v34  ;;  %643 = vmatpush.msra.mxu3 %v481_v35 }
  0x81   :  { %653 = vmatpush.msrb.mxu0 %v507_v32  ;;  %672 = vmatpush.msrb.mxu1 %v524_v33 }
  0x82   :  { %584 = vmatmul.f32.vlgmr.msra.gmra.mxu0 %v556_v38  ;;  %644 = vmatmul.f32.vlgmr.msra.gmra.mxu3 %v559_v39 }
  0x83   :  { %654 = vmatpush.msrb.mxu0 %v506_v36  ;;  %673 = vmatpush.msrb.mxu1 %v523_v37 }
  0x84   :  { %604 = vmatmul.f32.vlgmr.msra.gmra.mxu1 %v557_v42 }
  0x85   :  { %655 = vmatpush.msrb.mxu0 %v505_v40  ;;  %674 = vmatpush.msrb.mxu1 %v522_v41 }
  0x87   :  { %656 = vmatpush.msrb.mxu0 %v504_v43  ;;  %675 = vmatpush.msrb.mxu1 %v521_v44 }
  0x89   :  { %657 = vmatpush.msrb.mxu0 %v503_v45  ;;  %676 = vmatpush.msrb.mxu1 %v520_v46 }
  0x8b   :  { %658 = vmatpush.msrb.mxu0 %v502_v47  ;;  %677 = vmatpush.msrb.mxu1 %v519_v48 }
  0x8d   :  { %659 = vmatpush.msrb.mxu0 %v501_v49  ;;  %678 = vmatpush.msrb.mxu1 %v518_v50 }
  0x8f   :  { %660 = vmatpush.msrb.mxu0 %v500_v51  ;;  %679 = vmatpush.msrb.mxu1 %v517_v52 }
  0x91   :  { %661 = vmatpush.msrb.mxu0 %v499_v53  ;;  %680 = vmatpush.msrb.mxu1 %v516_v54 }
  0x93   :  { %662 = vmatpush.msrb.mxu0 %v498_v55  ;;  %681 = vmatpush.msrb.mxu1 %v515_v56 }
  0x95   :  { %663 = vmatpush.msrb.mxu0 %v497_v57  ;;  %682 = vmatpush.msrb.mxu1 %v514_v58 }
  0x96   :  { %664 = vmatmul.f32.vlgmr.msrb.gmra.mxu0 %v560_v59 }
  0x97   :  { %683 = vmatpush.msrb.mxu1 %v513_v60 }
  0x98   :  { %684 = vmatmul.f32.vlgmr.msrb.gmra.mxu1 %v561_v61 }
  0xd1   :  { %v282_v63 = vpop.f32.mrf.mxu0 }
  0xd2   :  { %v283_v0 = vadd.f32 %v750_v62, %v282_v63 }
  0xd4   :  { %v302_v1 = vpop.f32.mrf.mxu1  ;;  %v322_v3 = vpop.f32.mrf.mxu2 }
  0xd5   :  { %v303_v2 = vadd.f32 %v302_v1, %v283_v0 }
  0xd6   :  { %v342_v5 = vpop.f32.mrf.mxu3 }
  0xd7   :  { %v323_v4 = vadd.f32 %v322_v3, %v303_v2 }
  0xd9   :  { %v343_v6 = vadd.f32 %v342_v5, %v323_v4 }
  0xdb   :  { %v362_v7 = vpop.f32.mrf.mxu0 }
  0xdc   :  { %v363_v8 = vadd.f32 %v362_v7, %v343_v6 }
  0xdd   :  { %v382_v9 = vpop.f32.mrf.mxu1 }
  0xde   :  { %v383_v10 = vadd.f32 %v382_v9, %v363_v8 }
  0xdf   :  { %v402_v11 = vpop.f32.mrf.mxu2 }
  0xe0   :  { %v403_v12 = vadd.f32 %v402_v11, %v383_v10 }
  0xe1   :  { %v422_v13 = vpop.f32.mrf.mxu3 }
  0xe2   :  { %v423_v14 = vadd.f32 %v422_v13, %v403_v12 }
  0xe4   :  { %v691_v15 = vmul.f32 %v423_v14, %v423_v14 }
  0xe6   :  { %692 = vadd.xlane.f32.xlu0 %v691_v15 }
  0xff   :  { %v585_v17 = vpop.f32.mrf.mxu0 }
 0x100   :  { %v586_v18 = vadd.f32 %v751_v16, %v585_v17 }
 0x101   :  { %v605_v19 = vpop.f32.mrf.mxu1 }
 0x102   :  { %v606_v20 = vadd.f32 %v605_v19, %v586_v18 }
 0x103   :  { %v625_v21 = vpop.f32.mrf.mxu2 }
 0x104   :  { %v626_v22 = vadd.f32 %v625_v21, %v606_v20 }
 0x105   :  { %v645_v23 = vpop.f32.mrf.mxu3 }
 0x106   :  { %v646_v24 = vadd.f32 %v645_v23, %v626_v22 }
 0x113   :  { %v665_v25 = vpop.f32.mrf.mxu0 }
 0x114   :  { %v666_v26 = vadd.f32 %v665_v25, %v646_v24 }
 0x115   :  { %v685_v27 = vpop.f32.mrf.mxu1 }
 0x116   :  { %v686_v28 = vadd.f32 %v685_v27, %v666_v26 }
 0x118   :  { %v694_v29 = vmul.f32 %v686_v28, %v686_v28  ;;  %v688_v30 = vmul.f32 %v686_v28, %v423_v14 }
 0x11a   :  { %695 = vadd.xlane.f32.xlu0 %v694_v29  ;;  %689 = vadd.xlane.f32.xlu1 %v688_v30 }
 0x159   :  { %v693_v31 = vpop.xlane.xlu0 %692 }
 0x18d   :  { %v696_v32 = vpop.xlane.xlu0 %695  ;;  %v690_v42 = vpop.xlane.xlu1 %689 }
 0x18e   :  { %v697_v33 = vmul.f32 %v696_v32, %v693_v31 }
 0x190   :  { %v698_v34 = vmax.f32 %v697_v33, 1e-12 }
 0x192   :  { %752 = vrsqrt.f32 %v698_v34  ;;  %vm705_vm1 = vweird.f32 %v698_v34 }
 0x198   :  { %v753_v35 = vpop.eup %752 }
 0x199   :  { %v700_v36 = vmul.f32 %v753_v35, %v698_v34  ;;  %vm706_vm0 = vweird.f32 %v753_v35 }
 0x19a   :  { %vm707_vm2 = vmor %vm705_vm1, %vm706_vm0 }
 0x19b   :  { %v701_v37 = vmul.f32 %v753_v35, %v700_v36 }
 0x19d   :  { %v702_v38 = vmul.f32 0.5, %v701_v37 }
 0x19f   :  { %v703_v39 = vsub.f32 1.5, %v702_v38 }
 0x1a1   :  { %v704_v40 = vmul.f32 %v753_v35, %v703_v39 }
 0x1a3   :  { %v708_v41 = vsel %vm707_vm2, %v753_v35, %v704_v40 }
 0x1a4   :  { %v709_v43 = vmul.f32 %v708_v41, %v690_v42 }
 0x1a6   :  { %v739_v44 = vmul.f32 -100.0, %v709_v43 }
 0x1a8   :  { %v712_v45 = vmul.f32 1.442695, %v739_v44 }
 0x1aa   :  { %754 = vpow2.f32 %v712_v45 }
 0x1b0   :  { %v755_v46 = vpop.eup %754 }
 0x1b1   :  { %v714_v47 = vadd.f32 1.0, %v755_v46 }
 0x1b3   :  { %756 = vrcp.f32 %v714_v47  ;;  %v726_v51 = vand.u32 2147483648, %v714_v47  ;;  %v724_v53 = vand.u32 2147483647, %v714_v47  ;;  %vm720_vm4 = vweird.f32 %v714_v47 }
 0x1b5   :  { %v727_v55 = vor.u32 1.1754944e-38, %v726_v51  ;;  %vm725_vm7 = vcmp.eq.f32.partialorder %v724_v53, 8.507059e+37 }
 0x1b9   :  { %v757_v48 = vpop.eup %756 }
 0x1ba   :  { %v716_v49 = vmul.f32 %v757_v48, %v714_v47  ;;  %vm721_vm3 = vweird.f32 %v757_v48 }
 0x1bb   :  { %vm722_vm6 = vmor %vm720_vm4, %vm721_vm3 }
 0x1bc   :  { %v717_v50 = vsub.f32 1.0, %v716_v49 }
 0x1be   :  { %v718_v52 = vmul.f32 %v757_v48, %v717_v50 }
 0x1c0   :  { %v719_v54 = vadd.f32 %v757_v48, %v718_v52 }
 0x1c2   :  { %v723_v56 = vsel %vm722_vm6, %v757_v48, %v719_v54 }
 0x1c3   :  { %v728_v57 = vsel %vm725_vm7, %v727_v55, %v723_v56 }
 0x1c4   :  { %731 = vst.msk [vmem:[%s938_s6] sm:$0xff] %vm730_vm5, %v728_v57 }
 0x1c5   :  { %736 = vsyncpa [#allocation3], 1 }
 0x1c6   :  { %737 = vsyncpa [#allocation5], 1 }
 0x1c7   :  { %738 = vsyncpa [#allocation8], 1 }

</bundles_post_ra>
